<compile_context>
chip_gen: v7x
topology: tpu7x:2x2x1
jax: 0.10.0
libtpu: 0.0.40
codegen_flags: <defaults>
</compile_context>

<pallas_src>
import functools

import jax
import jax.numpy as jnp
from jax.experimental import pallas as pl
from jax.experimental.pallas import tpu as pltpu

NEG_SLOPE = 0.2  # LeakyReLU negative slope used by ConvUnit


def _tpu_generation():
    """Best-effort TPU generation (5/6/7); 0 if unknown."""
    try:
        kind = jax.devices()[0].device_kind.lower()
    except Exception:
        return 0
    for g in (7, 6, 5, 4):
        if f"v{g}" in kind:
            return g
    return 0


def _round_up(x, m):
    return -(-x // m) * m


# ---------------------------------------------------------------------------
# Pallas kernel: fused 4x4/stride-2 conv (2 aligned tap matmuls) + bias + LeakyReLU
# ---------------------------------------------------------------------------
def _fused_conv4x4s2_kernel(x_ref, w_ref, b_ref, o_ref, *, tm, row_stride):
    """x_ref : (1, (TM_oh+1)*Wrow, K8)  b-packed s2d rows of one M-tile (+1 halo i-row)
       w_ref : (2, K8, TN)              per-kh-tap weights (tap a hits row m + a*Wrow)
       b_ref : (1, TN)                  bias row (f32)
       o_ref : (1, tm, TN)              output rows (row m = oh_local*Wrow + ow)
    """
    # Both LHS slices start at multiples of 8 sublanes (0 and row_stride) and span
    # full lanes -> no relayout copies.  f32 MXU accumulation in both taps; only a
    # single (tm, tn) add remains (check bundle; a VMEM acc scratch is the fallback
    # if Mosaic does not chain the two matmuls).
    acc = jnp.dot(x_ref[0, 0:tm, :], w_ref[0],
                  preferred_element_type=jnp.float32)
    acc = acc + jnp.dot(x_ref[0, row_stride:row_stride + tm, :], w_ref[1],
                        preferred_element_type=jnp.float32)
    acc = acc + b_ref[...]
    acc = jnp.maximum(acc, NEG_SLOPE * acc)            # LeakyReLU(0.2)
    o_ref[0] = acc.astype(o_ref.dtype)


# ---------------------------------------------------------------------------
# Wrapper: ConvUnit.forward
# ---------------------------------------------------------------------------
def conv_unit_forward(x_nchw, w_oihw, bias, *, padding=0,
                      compute_dtype=jnp.bfloat16, out_dtype=None):
    """LeakyReLU(0.2)(Conv2d(kernel=4, stride=2, padding=padding)(x)), NCHW in/out."""
    kh, kw = int(w_oihw.shape[2]), int(w_oihw.shape[3])
    if (kh, kw) != (4, 4):
        # TODO(synk): only the ConvUnit default kernel_size=4 / stride=2 path is
        # lowered to the fused Pallas kernel.
        raise NotImplementedError("fused kernel supports kernel_size=4, stride=2")

    N, C, H, W = map(int, x_nchw.shape)
    Cout = int(w_oihw.shape[0])
    p = int(padding)
    if H + 2 * p < 4 or W + 2 * p < 4:
        raise ValueError("spatial dims too small for a 4x4 kernel")

    Ho = (H + 2 * p - 4) // 2 + 1
    Wo = (W + 2 * p - 4) // 2 + 1

    if compute_dtype is None:
        compute_dtype = jnp.bfloat16        # MXU-native on v5e/v6e/v7x
    if out_dtype is None:
        out_dtype = x_nchw.dtype            # set bf16 here to halve HBM writeback
    xbytes = jnp.dtype(compute_dtype).itemsize
    obytes = jnp.dtype(out_dtype).itemsize

    K8 = 8 * C                              # (b, r, s, c) packed contraction axis
    Wrow = _round_up(Wo, 8)                 # padded output-row width (sublane aligned)
    Cout_pad = _round_up(Cout, 128)         # lane-dense output channels

    # --- generation-aware tiling / VMEM budget ------------------------------
    gen = _tpu_generation()
    phys_vmem = (64 << 20) if (gen >= 7 or gen == 0) else (128 << 20)
    cap = phys_vmem - (16 << 20)            # leave headroom for the runtime

    if gen == 5 or Cout_pad % 256 != 0:
        tn = 128                            # v5e MXU is 4x 128x128: 256 gains nothing
    else:
        tn = 256                            # matches v6e/v7x 256x256 MXU
    if gen >= 7 and tn == 256 and 4 * K8 * tn * xbytes > (8 << 20):
        tn = 128                            # v7x escape hatch for huge K (C >= 512)

    def _tile_bytes(tm_oh):
        rows_in = (tm_oh + 1) * Wrow
        rows_out = tm_oh * Wrow
        return (2 * rows_in * K8 * xbytes       # input slab, double-buffered
                + 2 * rows_out * tn * obytes    # output tile, double-buffered
                + 3 * rows_out * tn * 4         # f32 accumulation temporaries
                + 2 * 2 * K8 * tn * xbytes      # weight tile, double-buffered
                + (1 << 20))                    # bias + misc slack

    budget = int(cap / 1.5)
    tm_oh = 1
    for cand in range(1, Ho + 1):
        if _tile_bytes(cand) > budget:
            break
        tm_oh = cand
        if cand * Wrow >= 2048:             # diminishing returns past ~2K output rows
            break
    # TODO(synk): for extreme W*C where even tm_oh=1 exceeds the budget, add a
    # K-/W-tiled variant (manual-DMA halo pipeline).
    n_mtiles = -(-Ho // tm_oh)
    Ho_pad = n_mtiles * tm_oh
    TM = tm_oh * Wrow                       # output rows per grid step
    rows_in = (tm_oh + 1) * Wrow            # input rows per grid step (incl. halo)
    vmem_limit = int(min(cap, max(_tile_bytes(tm_oh) * 1.4, 32 << 20)))

    # --- input: fused pad + space-to-depth + kw-tap packing + M-tile halo ----
    # One channels-last layout pass over the input (~2x its size because of the
    # kw-tap duplication); replaces the 4x im2col and the NCHW->NHWC transpose.
    x = x_nchw.astype(compute_dtype)
    tgt_h = 2 * (Ho_pad + 1)
    tgt_w = 2 * (Wrow + 1)
    x = jnp.pad(x, ((0, 0), (0, 0),
                    (p, max(0, tgt_h - H - p)),
                    (p, max(0, tgt_w - W - p))))[:, :, :tgt_h, :tgt_w]
    xs = x.reshape(N, C, Ho_pad + 1, 2, Wrow + 1, 2)     # (n, c, i, r, j, s)
    xs = xs.transpose(0, 2, 4, 3, 5, 1)                  # (n, i, j, r, s, c)
    xs = jnp.stack([xs[:, :, :Wrow], xs[:, :, 1:Wrow + 1]], axis=3)  # add b axis
    xs = xs.reshape(N, Ho_pad + 1, Wrow, K8)             # K order: (b, r, s, c)
    main = xs[:, :Ho_pad].reshape(N, n_mtiles, tm_oh, Wrow, K8)
    halo = xs[:, tm_oh::tm_oh][:, :, None]               # one halo i-row per tile
    xt = jnp.concatenate([main, halo], axis=2)           # (n, t, tm_oh+1, Wrow, K8)
    xt = xt.reshape(N * n_mtiles, rows_in, K8)

    # --- weights: tap a multiplies row m + a*Wrow; K packed as (b, r, s, c) ---
    wt = w_oihw.reshape(Cout, C, 2, 2, 2, 2)             # (o, c, a, r, b, s)
    wt = wt.transpose(2, 4, 3, 5, 1, 0).reshape(2, K8, Cout)
    wt = jnp.pad(wt, ((0, 0), (0, 0), (0, Cout_pad - Cout))).astype(compute_dtype)
    b2 = jnp.pad(bias, (0, Cout_pad - Cout)).reshape(1, Cout_pad).astype(jnp.float32)

    grid = (N * n_mtiles, Cout_pad // tn)
    out = pl.pallas_call(
        functools.partial(_fused_conv4x4s2_kernel, tm=TM, row_stride=Wrow),
        out_shape=jax.ShapeDtypeStruct((N * n_mtiles, TM, Cout_pad), out_dtype),
        grid_spec=pltpu.PrefetchScalarGridSpec(
            num_scalar_prefetch=0,
            grid=grid,
            in_specs=[
                pl.BlockSpec((1, rows_in, K8), lambda t, co: (t, 0, 0)),   # s2d rows
                pl.BlockSpec((2, K8, tn), lambda t, co: (0, 0, co)),       # tap weights
                pl.BlockSpec((1, tn), lambda t, co: (0, co)),              # bias
            ],
            out_specs=pl.BlockSpec((1, TM, tn), lambda t, co: (t, 0, co)),
        ),
        compiler_params=pltpu.CompilerParams(
            dimension_semantics=("parallel", "parallel"),
            vmem_limit_bytes=vmem_limit),
    )(xt, wt, b2)

    # TODO(synk): expose a channels-last (N, rows, C) entry/exit so stacked
    # ConvUnits skip this NCHW round-trip and the next layer's s2d transpose.
    y = out.reshape(N, Ho_pad, Wrow, Cout_pad)[:, :Ho, :Wo, :Cout]
    return y.transpose(0, 3, 1, 2)                        # back to NCHW


# ---------------------------------------------------------------------------
# Deterministic parameter setup (PyTorch Conv2d default init)
# ---------------------------------------------------------------------------
def init_conv_unit_params(key, in_c, out_c, k=4):
    k_w, k_b = jax.random.split(key)
    fan_in = in_c * k * k
    bound = 1.0 / (fan_in ** 0.5)
    w = jax.random.uniform(k_w, (out_c, in_c, k, k),
                           minval=-bound, maxval=bound, dtype=jnp.float32)
    b = jax.random.uniform(k_b, (out_c,),
                           minval=-bound, maxval=bound, dtype=jnp.float32)
    return w, b


if __name__ == "__main__":
    in_c, out_c = 4, 8
    key = jax.random.PRNGKey(0)
    k_x, k_p = jax.random.split(key)
    x = jax.random.normal(k_x, (2, in_c, 16, 16), dtype=jnp.float32)
    w, b = init_conv_unit_params(k_p, in_c, out_c)

    # Reference: XLA conv + bias + LeakyReLU (f32, highest precision).
    ref = jax.lax.conv_general_dilated(
        x, w, window_strides=(2, 2), padding="VALID",
        dimension_numbers=("NCHW", "OIHW", "NCHW"),
        precision=jax.lax.Precision.HIGHEST)
    ref = ref + b[None, :, None, None]
    ref = jnp.maximum(ref, NEG_SLOPE * ref)

    # Default path: bf16 MXU inputs, f32 accumulation.
    fwd = jax.jit(conv_unit_forward)
    y = jax.block_until_ready(fwd(x, w, b))
    assert y.shape == (2, out_c, 7, 7), y.shape
    assert bool(jnp.all(jnp.isfinite(y)))
    assert bool(jnp.allclose(y, ref, atol=2e-2, rtol=2e-2)), \
        float(jnp.max(jnp.abs(y - ref)))

    # Exact-f32 compute path: tight tolerance (catches regressions bf16 hides).
    fwd32 = jax.jit(functools.partial(conv_unit_forward, compute_dtype=jnp.float32))
    y32 = jax.block_until_ready(fwd32(x, w, b))
    assert y32.shape == (2, out_c, 7, 7), y32.shape
    assert bool(jnp.allclose(y32, ref, atol=1e-3, rtol=1e-3)), \
        float(jnp.max(jnp.abs(y32 - ref)))

    print("KERNEL_OK")
</pallas_src>

<mosaic_0001>
module attributes {stable_mosaic.version = 11 : i64} {
  func.func @_fused_conv4x4s2_kernel(%arg0: i32, %arg1: i32, %arg2: memref<1x64x32xbf16, #tpu.memory_space<vmem>>, %arg3: memref<2x32x128xbf16, #tpu.memory_space<vmem>>, %arg4: memref<1x128xf32, #tpu.memory_space<vmem>>, %arg5: memref<1x56x128xf32, #tpu.memory_space<vmem>>) attributes {dimension_semantics = [#tpu.dimension_semantics<parallel>, #tpu.dimension_semantics<parallel>], iteration_bounds = array<i64: 2, 1>, scalar_prefetch = 0 : i64, scratch_operands = 0 : i64, tpu.core_type = #tpu.core_type<tc>, window_params = [{transform_indices = @transform_0, window_bounds = array<i64: 1, 64, 32>}, {transform_indices = @transform_1, window_bounds = array<i64: 2, 32, 128>}, {transform_indices = @transform_2, window_bounds = array<i64: 1, 128>}, {transform_indices = @transform_3, window_bounds = array<i64: 1, 56, 128>}]} {
    %c0 = arith.constant 0 : index
    %c0_0 = arith.constant 0 : index
    %c0_1 = arith.constant 0 : index
    %0 = vector.load %arg2[%c0, %c0_0, %c0_1] : memref<1x64x32xbf16, #tpu.memory_space<vmem>>, vector<1x56x32xbf16>
    %1 = vector.shape_cast %0 : vector<1x56x32xbf16> to vector<56x32xbf16>
    %c0_2 = arith.constant 0 : index
    %c0_3 = arith.constant 0 : index
    %c0_4 = arith.constant 0 : index
    %2 = vector.load %arg3[%c0_2, %c0_3, %c0_4] : memref<2x32x128xbf16, #tpu.memory_space<vmem>>, vector<1x32x128xbf16>
    %3 = vector.shape_cast %2 : vector<1x32x128xbf16> to vector<32x128xbf16>
    %cst = arith.constant dense<0.000000e+00> : vector<56x128xf32>
    %4 = tpu.matmul %1, %3, %cst {dimension_numbers = #tpu.dot_dimension_numbers<[1], [0], [0], [1], [0, 0, 1, 1], [], []>} : vector<56x32xbf16>, vector<32x128xbf16>, vector<56x128xf32> -> vector<56x128xf32>
    %c0_5 = arith.constant 0 : index
    %c8 = arith.constant 8 : index
    %c0_6 = arith.constant 0 : index
    %5 = vector.load %arg2[%c0_5, %c8, %c0_6] : memref<1x64x32xbf16, #tpu.memory_space<vmem>>, vector<1x56x32xbf16>
    %6 = vector.shape_cast %5 : vector<1x56x32xbf16> to vector<56x32xbf16>
    %c1 = arith.constant 1 : index
    %c0_7 = arith.constant 0 : index
    %c0_8 = arith.constant 0 : index
    %7 = vector.load %arg3[%c1, %c0_7, %c0_8] : memref<2x32x128xbf16, #tpu.memory_space<vmem>>, vector<1x32x128xbf16>
    %8 = vector.shape_cast %7 : vector<1x32x128xbf16> to vector<32x128xbf16>
    %cst_9 = arith.constant dense<0.000000e+00> : vector<56x128xf32>
    %9 = tpu.matmul %6, %8, %cst_9 {dimension_numbers = #tpu.dot_dimension_numbers<[1], [0], [0], [1], [0, 0, 1, 1], [], []>} : vector<56x32xbf16>, vector<32x128xbf16>, vector<56x128xf32> -> vector<56x128xf32>
    %10 = arith.addf %4, %9 : vector<56x128xf32>
    %c0_10 = arith.constant 0 : index
    %c0_11 = arith.constant 0 : index
    %11 = vector.load %arg4[%c0_10, %c0_11] : memref<1x128xf32, #tpu.memory_space<vmem>>, vector<1x128xf32>
    %12 = vector.broadcast %11 : vector<1x128xf32> to vector<56x128xf32>
    %13 = arith.addf %10, %12 : vector<56x128xf32>
    %cst_12 = arith.constant 2.000000e-01 : f32
    %14 = vector.broadcast %cst_12 : f32 to vector<56x128xf32>
    %15 = arith.mulf %14, %13 : vector<56x128xf32>
    %16 = arith.maximumf %13, %15 : vector<56x128xf32>
    %c0_13 = arith.constant 0 : index
    %c0_14 = arith.constant 0 : index
    %c0_15 = arith.constant 0 : index
    %17 = vector.load %arg5[%c0_13, %c0_14, %c0_15] : memref<1x56x128xf32, #tpu.memory_space<vmem>>, vector<1x56x128xf32>
    %18 = vector.shape_cast %17 : vector<1x56x128xf32> to vector<56x128xf32>
    %19 = vector.shape_cast %16 : vector<56x128xf32> to vector<1x56x128xf32>
    tpu.vector_store %arg5[%c0_13, %c0_14, %c0_15], %19 {strides = array<i32>} : memref<1x56x128xf32, #tpu.memory_space<vmem>>, vector<1x56x128xf32>,
    return
  }
  func.func @transform_0(%arg0: i32, %arg1: i32) -> (i32, i32, i32) {
    %c0_i32 = arith.constant 0 : i32
    %c0_i32_0 = arith.constant 0 : i32
    %c0_i32_1 = arith.constant 0 : i32
    return %arg0, %c0_i32, %c0_i32_0 : i32, i32, i32
  }
  func.func @transform_1(%arg0: i32, %arg1: i32) -> (i32, i32, i32) {
    %c0_i32 = arith.constant 0 : i32
    %c0_i32_0 = arith.constant 0 : i32
    %c0_i32_1 = arith.constant 0 : i32
    return %c0_i32, %c0_i32_0, %arg1 : i32, i32, i32
  }
  func.func @transform_2(%arg0: i32, %arg1: i32) -> (i32, i32) {
    %c0_i32 = arith.constant 0 : i32
    %c0_i32_0 = arith.constant 0 : i32
    return %c0_i32, %arg1 : i32, i32
  }
  func.func @transform_3(%arg0: i32, %arg1: i32) -> (i32, i32, i32) {
    %c0_i32 = arith.constant 0 : i32
    %c0_i32_0 = arith.constant 0 : i32
    return %arg0, %c0_i32, %arg1 : i32, i32, i32
  }
}

</mosaic_0001>

<bundles_post_ra>
// kernel: conv_unit_forward.1
= control target key start
LH: loop header
LB: loop body
LE: loop exit
PB: predicated region body
PF: predicated region fallthrough
CT: control target
= control target key end

     0   :  { %s740_s12 = smov 0   ;;  %s742_s13 = smov 0   ;;  %s809_s0 = inlined_call_operand.vmem [shape: bf16[2,64,32], index: 0, kind: input, shape index: {}]   ;;  %s810_s1 = inlined_call_operand.vmem [shape: bf16[2,32,128], index: 1, kind: input, shape index: {}]   ;;  %s811_s2 = inlined_call_operand.vmem [shape: f32[1,128], index: 2, kind: input, shape index: {}]   ;;  %s812_s3 = inlined_call_operand.vmem [shape: f32[2,56,128], index: 3, kind: output, shape index: {}]  }
   0x1   :  { %s744_s14 = smov 0  }
   0x2 LB: > { %s25_s15 = sadd.s32 1, %s714_s13  ;;  %p587_p0 = scmp.ge.s32.totalorder %s718_s14, 1  ;;  %s718_s14 = sphi %s744_s14, %s13_s14   ;;  %s714_s13 = sphi %s742_s13, %s814_s13   ;;  %s710_s12 = sphi %s740_s12, %s813_s12  }
   0x3   : > { %p27_p1 = scmp.ge.s32.totalorder %s25_s15, 2  ;;  %p168_p2 = scmp.lt.s32.totalorder %s718_s14, 3 }
   0x5   : > { %s816_s15 = smov (%p27_p1, %s25_s15), 0  ;;  %p169_p3 = pnand %p587_p0, %p168_p2 }
   0x6   : > { %v684_v0 = vld [vmem:[%s810_s1 + $0x10] sm:$0xff] (!%p169_p3)   ;;  %p202_p4 = scmp.lt.s32.totalorder (!%p169_p3), %s710_s12, 1  ;;  %v685_v1 = vld [vmem:[%s810_s1] sm:$0xff] (!%p169_p3)   ;;  %v686_v2 = vld [vmem:[%s810_s1 + $0x18] sm:$0xff] (!%p169_p3)   ;;  %vm270_vm0 = vcmask (!%p169_p3), 261120  }
   0x7   : > { %172 = sbr.rel (%p169_p3) target bundleno = 254 (0xfe), region = 32  ;;  %631 = vmatprep.subr.bf16.mxu1 (!%p169_p3), %v684_v0  ;;  %643 = vmatprep.subr.bf16.mxu0 (!%p169_p3), %v685_v1  ;;  %v687_v3 = vld [vmem:[%s810_s1 + $0x8] sm:$0xff] (!%p169_p3)   ;;  %v615_v21 = vld [vmem:[%s811_s2] ss:$0 sm:$0xff] (!%p169_p3) }
   0x8   : > { %632 = vmatpush3.bf16.msra.mxu1 (!%p169_p3), %v684_v0  ;;  %644 = vmatpush3.bf16.msra.mxu0 (!%p169_p3), %v685_v1 }
   0x9   : > { %633 = vmatprep.subr.bf16.mxu1 (!%p169_p3), %v686_v2  ;;  %645 = vmatprep.subr.bf16.mxu0 (!%p169_p3), %v687_v3 }
   0xc   : > { %634 = vmatpush3.bf16.msra.mxu1 (!%p169_p3), %v686_v2  ;;  %646 = vmatpush3.bf16.msra.mxu0 (!%p169_p3), %v687_v3 }
   0xe   : > { %s818_s12 = smov (!%p202_p4, %s710_s12), 1 }
   0xf   : > { %s618_s24 = sshll.u32 %s818_s12, 5  ;;  %s659_s30 = smul.u32 56, %s818_s12 }
  0x10   : > { %s206_s27 = scalar_lea.vmem %s809_s0, %s618_s24 }
  0x11   : > { %v224_v4 = vld [vmem:[%s206_s27 + $0x4] sm:$0xf]  ;;  %v225_v5 = vld [vmem:[%s206_s27 + $0x8] sm:$0xf]  ;;  %v226_v6 = vld [vmem:[%s206_s27 + $0xc] sm:$0xf]  ;;  %s791_s6 = scalar_lea.vmem %s812_s3, %s659_s30 }
  0x12   : > { %v227_v7 = vld [vmem:[%s206_s27 + $0x10] sm:$0xf]  ;;  %v595_v8 = vcombine.low %v224_v4, %v225_v5  ;;  %v606_v9 = vcombine.low %v225_v5, %v226_v6  ;;  %v223_v10 = vld [vmem:[%s206_s27] sm:$0xf]  ;;  %v228_v11 = vld [vmem:[%s206_s27 + $0x14] sm:$0xf] }
  0x13   : > { %v596_v12 = vcombine.low %v226_v6, %v227_v7  ;;  %v605_v13 = vcombine.low %v223_v10, %v224_v4  ;;  %v229_v14 = vld [vmem:[%s206_s27 + $0x18] sm:$0xf]  ;;  %v607_v15 = vcombine.low %v227_v7, %v228_v11  ;;  %v694_v17 = vld [vmem:[%s206_s27 + $0x1c] ss:$0 sps:$4 sm:$0xff]  }
  0x14   : > { %635 = vmatprep.mubr.msk.bf16.mxu1 %vm270_vm0, %v595_v8  ;;  %v597_v16 = vcombine.low %v228_v11, %v229_v14  ;;  %v608_v18 = vcombine.low %v229_v14, %v229_v14 }
  0x15   : > { %647 = vmatprep.mubr.msk.bf16.mxu0 %vm270_vm0, %v605_v13  ;;  %636 = vmatmul.mubr.msk.bf16.vlgmr.msra.gmra.mrb[0].mxu1 %vm270_vm0, %v596_v12 }
  0x16   : > { %648 = vmatmul.mubr.msk.bf16.vlgmr.msra.gmra.mrb[0].mxu0 %vm270_vm0, %v606_v9  ;;  %639 = vmatprep.mubr.msk.bf16.mxu1 %vm270_vm0, %v597_v16 }
  0x17   : > { %651 = vmatprep.mubr.msk.bf16.mxu0 %vm270_vm0, %v607_v15 }
  0x1d   : > { %640 = vmatmul.mubr.msk.bf16.gmra.mrb[4].mxu1 %vm270_vm0, %v694_v17 }
  0x1e   : > { %652 = vmatmul.mubr.msk.bf16.gmra.mrb[4].mxu0 %vm270_vm0, %v608_v18 }
  0xe8   : > { %v637_v19 = vpop.f32.mrb[0].mxu1 }
  0xe9   : > { %v649_v20 = vpop.f32.mrb[0].mxu0  ;;  %v317_v22 = vpop.f32.mrb[1].mxu1 }
  0xea   : > { %v420_v23 = vadd.f32 %v649_v20, %v637_v19  ;;  %v411_v24 = vpop.f32.mrb[1].mxu0  ;;  %v638_v25 = vpop.f32.mrb[2].mxu1 }
  0xeb   : > { %v412_v26 = vadd.f32 %v411_v24, %v317_v22  ;;  %v650_v27 = vpop.f32.mrb[2].mxu0  ;;  %v320_v28 = vpop.f32.mrb[3].mxu1 }
  0xec   : > { %v450_v29 = vadd.f32 %v615_v21, %v420_v23  ;;  %v423_v30 = vadd.f32 %v650_v27, %v638_v25  ;;  %v414_v31 = vpop.f32.mrb[3].mxu0 }
  0xed   : > { %v448_v32 = vadd.f32 %v615_v21, %v412_v26  ;;  %v415_v33 = vadd.f32 %v414_v31, %v320_v28 }
  0xee   : > { %v457_v34 = vmul.f32 0.2, %v450_v29  ;;  %v451_v35 = vadd.f32 %v615_v21, %v423_v30 }
  0xef   : > { %v455_v36 = vmul.f32 0.2, %v448_v32  ;;  %v449_v37 = vadd.f32 %v615_v21, %v415_v33 }
  0xf0   : > { %v464_v38 = vmax.f32 %v450_v29, %v457_v34  ;;  %v458_v39 = vmul.f32 0.2, %v451_v35  ;;  %v641_v40 = vpop.f32.mrb[4].mxu1 }
  0xf1   : > { %v462_v41 = vmax.f32 %v448_v32, %v455_v36  ;;  %v456_v42 = vmul.f32 0.2, %v449_v37  ;;  %v653_v43 = vpop.f32.mrb[4].mxu0  ;;  %v333_v44 = vpop.f32.mrb[5].mxu1 }
  0xf2   : > { %471 = vst [vmem:[%s791_s6 + $0x10] sm:$0xff] %v464_v38  ;;  %v465_v45 = vmax.f32 %v451_v35, %v458_v39  ;;  %v436_v46 = vadd.f32 %v653_v43, %v641_v40  ;;  %v427_v47 = vpop.f32.mrb[5].mxu0  ;;  %v642_v48 = vpop.f32.mrb[6].mxu1 }
  0xf3   : > { %469 = vst [vmem:[%s791_s6] sm:$0xff] %v462_v41  ;;  %v463_v49 = vmax.f32 %v449_v37, %v456_v42  ;;  %v428_v50 = vadd.f32 %v427_v47, %v333_v44  ;;  %v654_v51 = vpop.f32.mrb[6].mxu0  ;;  %v336_v52 = vpop.f32.mrb[7].mxu1 }
  0xf4   : > { %472 = vst [vmem:[%s791_s6 + $0x18] sm:$0xff] %v465_v45  ;;  %v454_v53 = vadd.f32 %v615_v21, %v436_v46  ;;  %v430_v54 = vpop.f32.mrb[7].mxu0 }
  0xf5   : > { %470 = vst [vmem:[%s791_s6 + $0x8] sm:$0xff] %v463_v49  ;;  %v452_v55 = vadd.f32 %v615_v21, %v428_v50  ;;  %v431_v56 = vadd.f32 %v430_v54, %v336_v52 }
  0xf6   : > { %v461_v57 = vmul.f32 0.2, %v454_v53 }
  0xf7   : > { %v459_v58 = vmul.f32 0.2, %v452_v55  ;;  %v453_v59 = vadd.f32 %v615_v21, %v431_v56 }
  0xf8   : > { %v468_v60 = vmax.f32 %v454_v53, %v461_v57 }
  0xf9   : > { %v466_v61 = vmax.f32 %v452_v55, %v459_v58  ;;  %v460_v62 = vmul.f32 0.2, %v453_v59 }
  0xfa   : > { %475 = vst [vmem:[%s791_s6 + $0x30] sm:$0xff] %v468_v60 }
  0xfb   : > { %473 = vst [vmem:[%s791_s6 + $0x20] sm:$0xff] %v466_v61  ;;  %v467_v63 = vmax.f32 %v453_v59, %v460_v62 }
  0xfd   : > { %474 = vst [vmem:[%s791_s6 + $0x28] sm:$0xff] %v467_v63 }
  0xfe PF: > { %s13_s14 = sadd.s32 1, %s718_s14   ;;  %s813_s12 = smov %s714_s13 }
  0xff   : > { %p10_p5 = scmp.ge.s32.totalorder %s13_s14, 4   ;;  %s814_s13 = smov %s816_s15 }
 0x101   :  { %12 = sbr.rel (!%p10_p5) target bundleno = 2 (0x2), region = 69 }

</bundles_post_ra>
